<compile_context>
chip_gen: v7x
topology: tpu7x:2x2x1
jax: 0.10.0
libtpu: 0.0.40
codegen_flags: <defaults>
</compile_context>

<pallas_src>
from functools import partial

import jax
import jax.numpy as jnp
from jax import lax
from jax.experimental import pallas as pl
from jax.experimental.pallas import tpu as pltpu


def _bits_to_uniform_kernel(bits_ref, out_ref):
    """Convert raw uint32 random bits into uniform [0, 1) float32.

    Mantissa trick: drop the top 23 random bits into the mantissa of a float
    with exponent field 0x3F800000 (value in [1, 2)), then subtract 1.0.
    The bitcast is free; this avoids an int->float convert and a multiply.
    """
    ubits = bits_ref[...]
    mant = (ubits >> jnp.uint32(9)) | jnp.uint32(0x3F800000)
    out_ref[...] = lax.bitcast_convert_type(mant, jnp.float32) - jnp.float32(1.0)


@partial(jax.jit, static_argnames=("num_classes",))
def _dummy_forward_impl(key, num_classes):
    predicted_classes = num_classes if num_classes > 2 else 1
    # Lane-dense padded width (multiple of 128): the kernel store is a single
    # unmasked vst and the writeback DMA is clean on all current TPU gens.
    pad_cols = ((predicted_classes + 127) // 128) * 128

    # XLA-native RNG for the raw bits (fuses with neighbors; avoids TPU-only
    # hardware-PRNG primitives that do not lower everywhere).
    bits = jax.random.bits(key, (1, pad_cols), dtype=jnp.uint32)

    out_padded = pl.pallas_call(
        _bits_to_uniform_kernel,
        out_shape=jax.ShapeDtypeStruct((1, pad_cols), jnp.float32),
        in_specs=[pl.BlockSpec(memory_space=pltpu.MemorySpace.VMEM)],
        out_specs=pl.BlockSpec(memory_space=pltpu.MemorySpace.VMEM),
    )(bits)

    # Slice to the logical (1, predicted_classes) shape outside the kernel.
    return out_padded[:, :predicted_classes]


def dummy_graph_model_forward(g, key, num_classes=2):
    """Pallas equivalent of DummyGraphModel.forward.

    `g` is accepted for API parity with the PyTorch module but is ignored,
    exactly matching the reference semantics. `key` is a jax.random key; a
    fresh key per call reproduces torch.rand's "new draw every call" behavior.
    """
    del g  # forward() ignores the graph input
    return _dummy_forward_impl(key, num_classes)


if __name__ == "__main__":
    key = jax.random.PRNGKey(0)
    k_g, k_rand = jax.random.split(key)

    # Small synthetic "graph": 8 nodes with 16-dim features (ignored by forward).
    g_node_feats = jax.random.normal(k_g, (8, 16), dtype=jnp.float32)

    # num_classes=2 path -> predicted_classes = 1
    out = dummy_graph_model_forward(g_node_feats, k_rand, num_classes=2)
    out = jax.block_until_ready(out)
    assert out.shape == (1, 1), out.shape
    assert out.dtype == jnp.float32, out.dtype
    assert bool(jnp.all(out >= 0.0)) and bool(jnp.all(out < 1.0)), out

    # num_classes>2 path (non-multiple-of-128 class count, padded internally).
    out5 = dummy_graph_model_forward(g_node_feats, k_rand, num_classes=5)
    out5 = jax.block_until_ready(out5)
    assert out5.shape == (1, 5), out5.shape
    assert out5.dtype == jnp.float32, out5.dtype
    assert bool(jnp.all(out5 >= 0.0)) and bool(jnp.all(out5 < 1.0)), out5

    print("KERNEL_OK")
</pallas_src>

<mosaic_0001>
module attributes {stable_mosaic.version = 11 : i64} {
  func.func @_bits_to_uniform_kernel(%arg0: memref<1x128xi32, #tpu.memory_space<vmem>>, %arg1: memref<1x128xf32, #tpu.memory_space<vmem>>) attributes {dimension_semantics = [], scalar_prefetch = 0 : i64, scratch_operands = 0 : i64, tpu.core_type = #tpu.core_type<tc>} {
    %c0 = arith.constant 0 : index
    %c0_0 = arith.constant 0 : index
    %0 = vector.load %arg0[%c0, %c0_0] : memref<1x128xi32, #tpu.memory_space<vmem>>, vector<1x128xi32>
    %c9_i32 = arith.constant 9 : i32
    %1 = vector.broadcast %c9_i32 : i32 to vector<1x128xi32>
    %2 = arith.shrui %0, %1 : vector<1x128xi32>
    %c1065353216_i32 = arith.constant 1065353216 : i32
    %3 = vector.broadcast %c1065353216_i32 : i32 to vector<1x128xi32>
    %4 = arith.ori %2, %3 : vector<1x128xi32>
    %5 = tpu.bitcast %4 : vector<1x128xi32> -> vector<1x128xf32>
    %cst = arith.constant 1.000000e+00 : f32
    %6 = vector.broadcast %cst : f32 to vector<1x128xf32>
    %7 = arith.subf %5, %6 : vector<1x128xf32>
    %c0_1 = arith.constant 0 : index
    %c0_2 = arith.constant 0 : index
    %8 = vector.load %arg1[%c0_1, %c0_2] : memref<1x128xf32, #tpu.memory_space<vmem>>, vector<1x128xf32>
    tpu.vector_store %arg1[%c0_1, %c0_2], %7 {strides = array<i32>} : memref<1x128xf32, #tpu.memory_space<vmem>>, vector<1x128xf32>,
    return
  }
}

</mosaic_0001>

<bundles_post_ra>
// kernel: _dummy_forward_impl.1
= control target key start
LH: loop header
LB: loop body
LE: loop exit
PB: predicated region body
PF: predicated region fallthrough
CT: control target
= control target key end

     0   :  { %s81_s0 = inlined_call_operand.vmem [shape: u32[1,128], index: 0, kind: input, shape index: {}]   ;;  %s82_s1 = inlined_call_operand.hbm [shape: f32[1,128], index: 1, kind: output, shape index: {}]  }
   0x1   :  { %v9_v0 = vld [vmem:[%s81_s0] sm:$0x1] }
   0x2   :  { %6 = vsyncpa [#allocation3], 0  ;;  %v10_v1 = vshrl.u32 %v9_v0, 9  ;;  %s55_s8 = smov [#allocation2]  }
   0x3   :  { %s21_s9 = sshll.u32 %s55_s8, 4  ;;  %s22_s9 = int_to_ptr.vmem [resolvable:$true] %s21_s9 }
   0x4   :  { %v11_v2 = vor.u32 1065353216, %v10_v1  ;;  %s31_s10 = scalar_lea.vmem %s22_s9, 16  ;;  %s35_s11 = scalar_lea.vmem %s22_s9, 32 }
   0x5   :  { %p32_p0 = scmp.ne.s32.totalorder %s22_s9, %s31_s10  ;;  %p36_p1 = scmp.lt.s32.totalorder %s22_s9, %s22_s9 }
   0x6   :  { %v29_v3 = vadd.f32 -1.0, %v11_v2  ;;  %p37_p2 = scmp.lt.s32.totalorder %s35_s11, %s31_s10 }
   0x8   :  { %14 = vst [vmem:[#allocation2] sm:$0x1] %v29_v3  ;;  %p38_p3 = por %p37_p2, %p36_p1 }
   0xa   :  { %p39_p4 = pnand %p38_p3, %p32_p0 }
   0xc   :  { %42 = shalt.err (!%p39_p4)
}
   0xd   :  { %s43_s0 = scalar_lea.hbm %s82_s1, 16 }
   0xe   :  { %p44_p5 = scmp.ne.s32.totalorder %s82_s1, %s43_s0  ;;  %p47_p6 = scmp.lt.u32.totalorder %s43_s0, %s82_s1 }
  0x10   :  { %p49_p7 = pnand %p47_p6, %p44_p5 }
  0x12   :  { %52 = shalt.err (!%p49_p7)
}
  0x13   :  { %24 = dma.vmem_to_hbm [thread:$0]  %s22_s9, 16, %s82_s1, [#allocation3]  }
  0x14   :  { %53 = dma.done.wait [#allocation3], 16  }
  0x15   :  { %54 = vsyncadd [#allocation3], 4294967280 }
  0x16   :  { %28 = vsyncpa [#allocation3], 1 }

</bundles_post_ra>
